<compile_context>
chip_gen: v5e
topology: v5e:2x2
jax: 0.10.0
libtpu: 0.0.40
codegen_flags: <defaults>
</compile_context>

<pallas_src>
import jax
import jax.numpy as jnp
from jax.experimental import pallas as pl
from jax.experimental.pallas import tpu as pltpu

ALPHA = 0.9          # Tversky false-positive weight
BETA = 0.1           # Tversky false-negative weight
EPS = 1e-6
BCE_WEIGHT = 0.1

LANES = 128
SUBLANES = 8
VREG_ELEMS = SUBLANES * LANES          # 1024
TARGET_TILE_ROWS = 2048                # (2048,128) f32 block = 1 MiB
NUM_CORE_SPLITS = 2                    # v7x megacore split; serial elsewhere
NEG_BIG = -1e30                        # sigmoid -> 0 and bce -> 0 for masked elems


def _elementwise(x, t):
    """Per-element (p*t, p, t, bce) contributions; x, t are f32."""
    p = jax.nn.sigmoid(x)
    bce = jnp.maximum(x, 0.0) - x * t + jnp.log1p(jnp.exp(-jnp.abs(x)))
    return p * t, p, t, bce


def _make_kernel(block_rows, steps_per_core, rows, need_mask):
    def kernel(x_ref, t_ref, out_ref):
        c = pl.program_id(0)
        k = pl.program_id(1)

        @pl.when(k == 0)
        def _init():
            out_ref[...] = jnp.zeros_like(out_ref)

        x = x_ref[...].astype(jnp.float32)
        t = t_ref[...].astype(jnp.float32)

        if need_mask:
            # Mask rows beyond the logical extent (partial / duplicated block).
            row_start = (c * steps_per_core + k) * block_rows
            row_ids = jax.lax.broadcasted_iota(
                jnp.int32, (block_rows, LANES), 0) + row_start
            valid = row_ids < rows
            x = jnp.where(valid, x, NEG_BIG)
            t = jnp.where(valid, t, 0.0)

        pt, p, tt, bce = _elementwise(x, t)

        def fold(v):
            # (block_rows,128) -> (8,128) using leading-axis VPU adds only.
            return jnp.sum(v.reshape(block_rows // SUBLANES, SUBLANES, LANES),
                           axis=0)

        out_ref[0, 0] += fold(pt)
        out_ref[0, 1] += fold(p)
        out_ref[0, 2] += fold(tt)
        out_ref[0, 3] += fold(bce)

    return kernel


@jax.jit
def combo_loss(logits: jax.Array, targets: jax.Array) -> jax.Array:
    """logits, targets: identical shape (e.g. NCHW). Returns scalar f32 loss."""
    n = logits.size
    xf = logits.reshape(-1)
    tf = targets.reshape(-1)

    n_main = (n // VREG_ELEMS) * VREG_ELEMS
    if n_main == 0:
        # Tiny input (< 1024 elements): pad up to one vreg (cheap).
        pad = VREG_ELEMS - n
        xf = jnp.concatenate([xf.astype(jnp.float32),
                              jnp.full((pad,), NEG_BIG, jnp.float32)])
        tf = jnp.concatenate([tf.astype(jnp.float32),
                              jnp.zeros((pad,), jnp.float32)])
        n_main = VREG_ELEMS

    rows = n_main // LANES                       # multiple of 8
    x2 = xf[:n_main].reshape(rows, LANES)        # row-major reshape: no copy
    t2 = tf[:n_main].reshape(rows, LANES)

    block_rows = min(TARGET_TILE_ROWS, rows)
    num_row_blocks = -(-rows // block_rows)
    num_splits = min(NUM_CORE_SPLITS, num_row_blocks)
    steps_per_core = -(-num_row_blocks // num_splits)
    exact_cover = (num_splits * steps_per_core == num_row_blocks)
    need_mask = (rows % block_rows != 0) or (not exact_cover)

    if exact_cover:
        in_map = lambda c, k: (c * steps_per_core + k, 0)
    else:
        last_blk = num_row_blocks - 1
        in_map = lambda c, k: (jnp.minimum(c * steps_per_core + k, last_blk), 0)

    partials = pl.pallas_call(
        _make_kernel(block_rows, steps_per_core, rows, need_mask),
        out_shape=jax.ShapeDtypeStruct((num_splits, 4, SUBLANES, LANES),
                                       jnp.float32),
        grid_spec=pltpu.PrefetchScalarGridSpec(
            num_scalar_prefetch=0,
            grid=(num_splits, steps_per_core),
            in_specs=[
                pl.BlockSpec((block_rows, LANES), in_map),
                pl.BlockSpec((block_rows, LANES), in_map),
            ],
            out_specs=pl.BlockSpec((1, 4, SUBLANES, LANES),
                                   lambda c, k: (c, 0, 0, 0)),
        ),
        compiler_params=pltpu.CompilerParams(
            dimension_semantics=("parallel", "arbitrary"),
        ),
    )(x2, t2)

    sums = jnp.sum(partials, axis=(0, 2, 3))     # (4,) single final reduce
    s_pt, s_p, s_t, s_bce = sums[0], sums[1], sums[2], sums[3]

    if n_main < n:
        # <1024-element tail handled in plain JAX (avoids padding copy of the
        # whole tensor).
        xt = xf[n_main:].astype(jnp.float32)
        tt = tf[n_main:].astype(jnp.float32)
        pt_t, p_t, t_t, bce_t = _elementwise(xt, tt)
        s_pt = s_pt + jnp.sum(pt_t)
        s_p = s_p + jnp.sum(p_t)
        s_t = s_t + jnp.sum(t_t)
        s_bce = s_bce + jnp.sum(bce_t)

    tp = s_pt
    fp = s_p - s_pt
    fn = s_t - s_pt
    ti = (tp + EPS) / (tp + ALPHA * fp + BETA * fn + EPS)
    loss_tversky = 1.0 - ti
    loss_bce = s_bce / n
    return BCE_WEIGHT * loss_bce + (1.0 - BCE_WEIGHT) * loss_tversky


def _reference(logits, targets):
    x = logits.astype(jnp.float32)
    t = targets.astype(jnp.float32)
    p = jax.nn.sigmoid(x)
    tp = jnp.sum(p * t)
    fp = jnp.sum(p * (1 - t))
    fn = jnp.sum((1 - p) * t)
    ti = (tp + EPS) / (tp + ALPHA * fp + BETA * fn + EPS)
    tversky = 1.0 - ti
    bce = jnp.mean(jnp.maximum(x, 0.0) - x * t + jnp.log1p(jnp.exp(-jnp.abs(x))))
    return BCE_WEIGHT * bce + (1.0 - BCE_WEIGHT) * tversky


if __name__ == "__main__":
    key = jax.random.PRNGKey(0)
    k1, k2 = jax.random.split(key)
    # NCHW, like the PyTorch module would receive.
    logits = jax.random.normal(k1, (2, 4, 16, 16), dtype=jnp.float32)
    targets = (jax.random.uniform(k2, (2, 4, 16, 16)) > 0.5).astype(jnp.float32)

    loss = combo_loss(logits, targets)
    jax.block_until_ready(loss)

    ref = _reference(logits, targets)
    assert jnp.allclose(loss, ref, atol=1e-5, rtol=1e-4), (loss, ref)
    print("KERNEL_OK")
</pallas_src>

<mosaic_0001>
module attributes {stable_mosaic.version = 11 : i64} {
  func.func @kernel(%arg0: i32, %arg1: i32, %arg2: memref<16x128xf32, #tpu.memory_space<vmem>>, %arg3: memref<16x128xf32, #tpu.memory_space<vmem>>, %arg4: memref<1x4x8x128xf32, #tpu.memory_space<vmem>>) attributes {dimension_semantics = [#tpu.dimension_semantics<parallel>, #tpu.dimension_semantics<arbitrary>], iteration_bounds = array<i64: 1, 1>, scalar_prefetch = 0 : i64, scratch_operands = 0 : i64, tpu.core_type = #tpu.core_type<tc>, window_params = [{transform_indices = @transform_0, window_bounds = array<i64: 16, 128>}, {transform_indices = @transform_1, window_bounds = array<i64: 16, 128>}, {transform_indices = @transform_2, window_bounds = array<i64: 1, 4, 8, 128>}]} {
    %c0_i32 = arith.constant 0 : i32
    %0 = arith.cmpi eq, %arg1, %c0_i32 : i32
    %1 = arith.extui %0 : i1 to i32
    %c0_i32_0 = arith.constant 0 : i32
    %2 = arith.cmpi ne, %1, %c0_i32_0 : i32
    scf.if %2 {
      %cst_39 = arith.constant 0.000000e+00 : f32
      %53 = vector.broadcast %cst_39 : f32 to vector<1x4x8x128xf32>
      %c0_40 = arith.constant 0 : index
      %c0_41 = arith.constant 0 : index
      %c0_42 = arith.constant 0 : index
      %c0_43 = arith.constant 0 : index
      %54 = vector.load %arg4[%c0_40, %c0_41, %c0_42, %c0_43] : memref<1x4x8x128xf32, #tpu.memory_space<vmem>>, vector<1x4x8x128xf32>
      tpu.vector_store %arg4[%c0_40, %c0_41, %c0_42, %c0_43], %53 {strides = array<i32>} : memref<1x4x8x128xf32, #tpu.memory_space<vmem>>, vector<1x4x8x128xf32>,
    } else {
    }
    %c0 = arith.constant 0 : index
    %c0_1 = arith.constant 0 : index
    %3 = vector.load %arg2[%c0, %c0_1] : memref<16x128xf32, #tpu.memory_space<vmem>>, vector<16x128xf32>
    %c0_2 = arith.constant 0 : index
    %c0_3 = arith.constant 0 : index
    %4 = vector.load %arg3[%c0_2, %c0_3] : memref<16x128xf32, #tpu.memory_space<vmem>>, vector<16x128xf32>
    %5 = arith.negf %3 : vector<16x128xf32>
    %6 = math.exp %5 : vector<16x128xf32>
    %cst = arith.constant 1.000000e+00 : f32
    %7 = vector.broadcast %cst : f32 to vector<16x128xf32>
    %8 = arith.addf %7, %6 : vector<16x128xf32>
    %9 = arith.divf %7, %8 : vector<16x128xf32>
    %cst_4 = arith.constant 0.000000e+00 : f32
    %10 = vector.broadcast %cst_4 : f32 to vector<16x128xf32>
    %11 = arith.maximumf %3, %10 : vector<16x128xf32>
    %12 = arith.mulf %3, %4 : vector<16x128xf32>
    %13 = arith.subf %11, %12 : vector<16x128xf32>
    %14 = math.absf %3 : vector<16x128xf32>
    %cst_5 = arith.constant 0.000000e+00 : f32
    %15 = vector.broadcast %cst_5 : f32 to vector<16x128xf32>
    %16 = arith.subf %15, %14 : vector<16x128xf32>
    %17 = math.exp %16 : vector<16x128xf32>
    %18 = math.log1p %17 : vector<16x128xf32>
    %19 = arith.addf %13, %18 : vector<16x128xf32>
    %20 = arith.mulf %9, %4 : vector<16x128xf32>
    %c0_6 = arith.constant 0 : index
    %c0_7 = arith.constant 0 : index
    %c0_8 = arith.constant 0 : index
    %c0_9 = arith.constant 0 : index
    %21 = vector.load %arg4[%c0_6, %c0_7, %c0_8, %c0_9] : memref<1x4x8x128xf32, #tpu.memory_space<vmem>>, vector<1x1x8x128xf32>
    %22 = vector.shape_cast %21 : vector<1x1x8x128xf32> to vector<8x128xf32>
    %23 = vector.shape_cast %20 : vector<16x128xf32> to vector<2x8x128xf32>
    %cst_10 = arith.constant dense<0.000000e+00> : vector<8x128xf32>
    %24 = vector.multi_reduction <add>, %23, %cst_10 [0] : vector<2x8x128xf32> to vector<8x128xf32>
    %25 = arith.addf %22, %24 : vector<8x128xf32>
    %c0_11 = arith.constant 0 : index
    %c0_12 = arith.constant 0 : index
    %c0_13 = arith.constant 0 : index
    %c0_14 = arith.constant 0 : index
    %26 = vector.load %arg4[%c0_11, %c0_12, %c0_13, %c0_14] : memref<1x4x8x128xf32, #tpu.memory_space<vmem>>, vector<1x1x8x128xf32>
    %27 = vector.shape_cast %26 : vector<1x1x8x128xf32> to vector<8x128xf32>
    %28 = vector.shape_cast %25 : vector<8x128xf32> to vector<1x1x8x128xf32>
    tpu.vector_store %arg4[%c0_11, %c0_12, %c0_13, %c0_14], %28 {strides = array<i32>} : memref<1x4x8x128xf32, #tpu.memory_space<vmem>>, vector<1x1x8x128xf32>,
    %c0_15 = arith.constant 0 : index
    %c1 = arith.constant 1 : index
    %c0_16 = arith.constant 0 : index
    %c0_17 = arith.constant 0 : index
    %29 = vector.load %arg4[%c0_15, %c1, %c0_16, %c0_17] : memref<1x4x8x128xf32, #tpu.memory_space<vmem>>, vector<1x1x8x128xf32>
    %30 = vector.shape_cast %29 : vector<1x1x8x128xf32> to vector<8x128xf32>
    %31 = vector.shape_cast %9 : vector<16x128xf32> to vector<2x8x128xf32>
    %cst_18 = arith.constant dense<0.000000e+00> : vector<8x128xf32>
    %32 = vector.multi_reduction <add>, %31, %cst_18 [0] : vector<2x8x128xf32> to vector<8x128xf32>
    %33 = arith.addf %30, %32 : vector<8x128xf32>
    %c0_19 = arith.constant 0 : index
    %c1_20 = arith.constant 1 : index
    %c0_21 = arith.constant 0 : index
    %c0_22 = arith.constant 0 : index
    %34 = vector.load %arg4[%c0_19, %c1_20, %c0_21, %c0_22] : memref<1x4x8x128xf32, #tpu.memory_space<vmem>>, vector<1x1x8x128xf32>
    %35 = vector.shape_cast %34 : vector<1x1x8x128xf32> to vector<8x128xf32>
    %36 = vector.shape_cast %33 : vector<8x128xf32> to vector<1x1x8x128xf32>
    tpu.vector_store %arg4[%c0_19, %c1_20, %c0_21, %c0_22], %36 {strides = array<i32>} : memref<1x4x8x128xf32, #tpu.memory_space<vmem>>, vector<1x1x8x128xf32>,
    %c0_23 = arith.constant 0 : index
    %c2 = arith.constant 2 : index
    %c0_24 = arith.constant 0 : index
    %c0_25 = arith.constant 0 : index
    %37 = vector.load %arg4[%c0_23, %c2, %c0_24, %c0_25] : memref<1x4x8x128xf32, #tpu.memory_space<vmem>>, vector<1x1x8x128xf32>
    %38 = vector.shape_cast %37 : vector<1x1x8x128xf32> to vector<8x128xf32>
    %39 = vector.shape_cast %4 : vector<16x128xf32> to vector<2x8x128xf32>
    %cst_26 = arith.constant dense<0.000000e+00> : vector<8x128xf32>
    %40 = vector.multi_reduction <add>, %39, %cst_26 [0] : vector<2x8x128xf32> to vector<8x128xf32>
    %41 = arith.addf %38, %40 : vector<8x128xf32>
    %c0_27 = arith.constant 0 : index
    %c2_28 = arith.constant 2 : index
    %c0_29 = arith.constant 0 : index
    %c0_30 = arith.constant 0 : index
    %42 = vector.load %arg4[%c0_27, %c2_28, %c0_29, %c0_30] : memref<1x4x8x128xf32, #tpu.memory_space<vmem>>, vector<1x1x8x128xf32>
    %43 = vector.shape_cast %42 : vector<1x1x8x128xf32> to vector<8x128xf32>
    %44 = vector.shape_cast %41 : vector<8x128xf32> to vector<1x1x8x128xf32>
    tpu.vector_store %arg4[%c0_27, %c2_28, %c0_29, %c0_30], %44 {strides = array<i32>} : memref<1x4x8x128xf32, #tpu.memory_space<vmem>>, vector<1x1x8x128xf32>,
    %c0_31 = arith.constant 0 : index
    %c3 = arith.constant 3 : index
    %c0_32 = arith.constant 0 : index
    %c0_33 = arith.constant 0 : index
    %45 = vector.load %arg4[%c0_31, %c3, %c0_32, %c0_33] : memref<1x4x8x128xf32, #tpu.memory_space<vmem>>, vector<1x1x8x128xf32>
    %46 = vector.shape_cast %45 : vector<1x1x8x128xf32> to vector<8x128xf32>
    %47 = vector.shape_cast %19 : vector<16x128xf32> to vector<2x8x128xf32>
    %cst_34 = arith.constant dense<0.000000e+00> : vector<8x128xf32>
    %48 = vector.multi_reduction <add>, %47, %cst_34 [0] : vector<2x8x128xf32> to vector<8x128xf32>
    %49 = arith.addf %46, %48 : vector<8x128xf32>
    %c0_35 = arith.constant 0 : index
    %c3_36 = arith.constant 3 : index
    %c0_37 = arith.constant 0 : index
    %c0_38 = arith.constant 0 : index
    %50 = vector.load %arg4[%c0_35, %c3_36, %c0_37, %c0_38] : memref<1x4x8x128xf32, #tpu.memory_space<vmem>>, vector<1x1x8x128xf32>
    %51 = vector.shape_cast %50 : vector<1x1x8x128xf32> to vector<8x128xf32>
    %52 = vector.shape_cast %49 : vector<8x128xf32> to vector<1x1x8x128xf32>
    tpu.vector_store %arg4[%c0_35, %c3_36, %c0_37, %c0_38], %52 {strides = array<i32>} : memref<1x4x8x128xf32, #tpu.memory_space<vmem>>, vector<1x1x8x128xf32>,
    return
  }
  func.func @transform_0(%arg0: i32, %arg1: i32) -> (i32, i32) {
    %c1_i32 = arith.constant 1 : i32
    %0 = arith.muli %arg0, %c1_i32 : i32
    %1 = arith.addi %0, %arg1 : i32
    %c0_i32 = arith.constant 0 : i32
    %c0_i32_0 = arith.constant 0 : i32
    return %1, %c0_i32 : i32, i32
  }
  func.func @transform_1(%arg0: i32, %arg1: i32) -> (i32, i32) {
    %c1_i32 = arith.constant 1 : i32
    %0 = arith.muli %arg0, %c1_i32 : i32
    %1 = arith.addi %0, %arg1 : i32
    %c0_i32 = arith.constant 0 : i32
    %c0_i32_0 = arith.constant 0 : i32
    return %1, %c0_i32 : i32, i32
  }
  func.func @transform_2(%arg0: i32, %arg1: i32) -> (i32, i32, i32, i32) {
    %c0_i32 = arith.constant 0 : i32
    %c0_i32_0 = arith.constant 0 : i32
    %c0_i32_1 = arith.constant 0 : i32
    %c0_i32_2 = arith.constant 0 : i32
    return %arg0, %c0_i32, %c0_i32_0, %c0_i32_1 : i32, i32, i32, i32
  }
}

</mosaic_0001>

<bundles_post_ra>
// kernel: combo_loss.1
= control target key start
LH: loop header
LB: loop body
LE: loop exit
PB: predicated region body
PF: predicated region fallthrough
CT: control target
= control target key end

     0   :  { %s265_s0 = inlined_call_operand.vmem [shape: f32[16,128], index: 0, kind: input, shape index: {}]   ;;  %s266_s1 = inlined_call_operand.vmem [shape: f32[16,128], index: 1, kind: input, shape index: {}]   ;;  %s267_s2 = inlined_call_operand.vmem [shape: f32[1,4,8,128], index: 2, kind: output, shape index: {}]  }
   0x1   :  { %v63_v0 = vld [vmem:[%s265_s0] sm:$0xff]  ;;  %v64_v1 = vld [vmem:[%s265_s0 + $0x8] sm:$0xff] }
   0x2   :  { %v225_v2 = vld [vmem:[%s266_s1] sm:$0xff]  ;;  %v230_v3 = vld [vmem:[%s266_s1 + $0x8] sm:$0xff]  ;;  %v176_v4 = vmul.f32 -1.442695, %v63_v0  ;;  %v177_v5 = vmul.f32 -1.442695, %v64_v1 }
   0x3   :  { %v111_v6 = vand.u32 2147483647, %v63_v0  ;;  %v112_v7 = vand.u32 2147483647, %v64_v1  ;;  %v152_v8 = vadd.f32 %v230_v3, %v225_v2  ;;  %v105_v18 = vmax.f32 %v63_v0, 0.0 }
   0x4   :  { %185 = vpow2.f32 %v176_v4  ;;  %v107_v19 = vmul.f32 %v225_v2, %v63_v0  ;;  %v106_v25 = vmax.f32 %v64_v1, 0.0  ;;  %v108_v27 = vmul.f32 %v230_v3, %v64_v1 }
   0x5   :  { %187 = vpow2.f32 %v177_v5  ;;  %v113_v9 = vsub.f32 0.0, %v111_v6  ;;  %v114_v10 = vsub.f32 0.0, %v112_v7  ;;  %181 = vst [vmem:[%s267_s2 + $0x10] sm:$0xff] %v152_v8 }
   0x6   :  { %v109_v28 = vsub.f32 %v105_v18, %v107_v19  ;;  %v110_v45 = vsub.f32 %v106_v25, %v108_v27 }
   0x7   :  { %v115_v11 = vmul.f32 1.442695, %v113_v9  ;;  %v117_v12 = vmul.f32 1.442695, %v114_v10 }
   0x9   :  { %189 = vpow2.f32 %v115_v11 }
   0xa   :  { %v186_v13 = vpop.eup %185  ;;  %191 = vpow2.f32 %v117_v12 }
   0xb   :  { %v188_v14 = vpop.eup %187  ;;  %v73_v15 = vadd.f32 1.0, %v186_v13 }
   0xc   :  { %v74_v16 = vadd.f32 1.0, %v188_v14 }
   0xd   :  { %193 = vrcp.f32 %v73_v15  ;;  %vm80_vm0 = vweird.f32 %v73_v15  ;;  %v84_v34 = vand.u32 2147483647, %v73_v15  ;;  %v86_v35 = vand.u32 2147483648, %v73_v15 }
   0xe   :  { %195 = vrcp.f32 %v74_v16  ;;  %vm95_vm2 = vweird.f32 %v74_v16  ;;  %v101_v39 = vand.u32 2147483648, %v74_v16  ;;  %v99_v41 = vand.u32 2147483647, %v74_v16 }
   0xf   :  { %v190_v17 = vpop.eup %189  ;;  %v87_v50 = vor.u32 1.1754944e-38, %v86_v35  ;;  %vm85_vm7 = vcmp.eq.f32.partialorder %v84_v34, 8.507059e+37 }
  0x10   :  { %v192_v20 = vpop.eup %191  ;;  %v119_v21 = vadd.f32 1.0, %v190_v17  ;;  %v122_v22 = vmul.f32 -0.5, %v190_v17  ;;  %v125_v32 = vand.u32 2147483647, %v190_v17  ;;  %v102_v54 = vor.u32 1.1754944e-38, %v101_v39 }
  0x11   :  { %v128_v23 = vadd.f32 1.0, %v192_v20  ;;  %v131_v24 = vmul.f32 -0.5, %v192_v20  ;;  %v134_v37 = vand.u32 2147483647, %v192_v20  ;;  %vm100_vm9 = vcmp.eq.f32.partialorder %v99_v41, 8.507059e+37 }
  0x12   :  { %197 = vlog2.f32 %v119_v21  ;;  %v123_v29 = vadd.f32 1.0, %v122_v22  ;;  %vm239_vm4 = vcmp.lt.f32.partialorder %v125_v32, 0.0004427343 }
  0x13   :  { %v194_v26 = vpop.eup %193  ;;  %199 = vlog2.f32 %v128_v23  ;;  %v132_v33 = vadd.f32 1.0, %v131_v24  ;;  %vm135_vm6 = vcmp.lt.f32.partialorder %v134_v37, 0.0004427343 }
  0x14   :  { %v196_v30 = vpop.eup %195  ;;  %v76_v31 = vmul.f32 %v194_v26, %v73_v15  ;;  %vm81_vm1 = vweird.f32 %v194_v26  ;;  %v124_v42 = vmul.f32 %v190_v17, %v123_v29 }
  0x15   :  { %v91_v36 = vmul.f32 %v196_v30, %v74_v16  ;;  %vm96_vm3 = vweird.f32 %v196_v30  ;;  %v133_v47 = vmul.f32 %v192_v20, %v132_v33  ;;  %vm244_vm5 = vmor %vm80_vm0, %vm81_vm1 }
  0x16   :  { %v77_v38 = vsub.f32 1.0, %v76_v31  ;;  %vm97_vm8 = vmor %vm95_vm2, %vm96_vm3 }
  0x17   :  { %v92_v40 = vsub.f32 1.0, %v91_v36 }
  0x18   :  { %v198_v43 = vpop.eup %197  ;;  %v78_v44 = vmul.f32 %v194_v26, %v77_v38 }
  0x19   :  { %v200_v48 = vpop.eup %199  ;;  %v93_v51 = vmul.f32 %v196_v30, %v92_v40  ;;  %v121_v52 = vmul.f32 0.6931472, %v198_v43 }
  0x1a   :  { %v79_v53 = vadd.f32 %v194_v26, %v78_v44  ;;  %v130_v55 = vmul.f32 0.6931472, %v200_v48 }
  0x1b   :  { %v94_v56 = vadd.f32 %v196_v30, %v93_v51  ;;  %v127_v57 = vsel %vm239_vm4, %v124_v42, %v121_v52 }
  0x1c   :  { %v83_v58 = vsel %vm244_vm5, %v194_v26, %v79_v53  ;;  %v136_v59 = vsel %vm135_vm6, %v133_v47, %v130_v55  ;;  %v137_v60 = vadd.f32 %v127_v57, %v109_v28 }
  0x1d   :  { %v88_v61 = vsel %vm85_vm7, %v87_v50, %v83_v58  ;;  %v98_v62 = vsel %vm97_vm8, %v196_v30, %v94_v56  ;;  %v138_v63 = vadd.f32 %v136_v59, %v110_v45 }
  0x1e   :  { %v103_v0 = vsel %vm100_vm9, %v102_v54, %v98_v62  ;;  %v139_v1 = vmul.f32 %v88_v61, %v225_v2 }
  0x1f   :  { %v140_v4 = vmul.f32 %v103_v0, %v230_v3  ;;  %v147_v5 = vadd.f32 %v103_v0, %v88_v61  ;;  %v157_v6 = vadd.f32 %v138_v63, %v137_v60 }
  0x21   :  { %v142_v7 = vadd.f32 %v140_v4, %v139_v1  ;;  %179 = vst [vmem:[%s267_s2 + $0x8] sm:$0xff] %v147_v5 }
  0x22   :  { %183 = vst [vmem:[%s267_s2 + $0x18] sm:$0xff] %v157_v6 }
  0x23   :  { %144 = vst [vmem:[%s267_s2] sm:$0xff] %v142_v7 }

</bundles_post_ra>
